<compile_context>
chip_gen: v7x
topology: tpu7x:2x2x1
jax: 0.10.0
libtpu: 0.0.40
codegen_flags: <defaults>
</compile_context>

<pallas_src>
import jax
import jax.numpy as jnp
from jax.experimental import pallas as pl
from jax.experimental.pallas import tpu as pltpu


def rnn_fc_kernel(x_ref, wih_ref, brnn_ref, wfc_ref, bfc_ref, out_ref):
    # x_ref:    (bb, I)   batch tile of inputs
    # wih_ref:  (I,  H)   W_ih^T (pre-transposed in wrapper)
    # brnn_ref: (1,  H)   b_ih + b_hh
    # wfc_ref:  (H,  O)   W_fc^T (pre-transposed in wrapper)
    # bfc_ref:  (1,  O)   b_fc
    pre = jnp.dot(x_ref[...], wih_ref[...], preferred_element_type=jnp.float32)
    h1 = jnp.tanh(pre + brnn_ref[...])                       # (bb, H), f32
    out = jnp.dot(h1, wfc_ref[...], preferred_element_type=jnp.float32)
    out = out + bfc_ref[...]                                  # (bb, O), f32
    out_ref[...] = out.astype(out_ref.dtype)


def _pick_batch_tile(B, block_b):
    """Largest tile <= block_b, multiple of 8, with >=2 grid steps when B allows."""
    if B <= 8:
        return B                       # single tile == full array dim (legal layout)
    bb = min(block_b, B)
    if bb >= B:
        bb = -(-B // 2)                # ceil(B/2) -> at least 2 grid steps (v7x 2 TCs)
    bb = ((bb + 7) // 8) * 8           # sublane-dim multiple of 8
    return bb


def rnn_forward(x, params, *, block_b=1024):
    """x: (B, input_size) f32. Returns (B, output_size) f32."""
    w_ih, w_hh, b_ih, b_hh, w_fc, b_fc = params
    del w_hh  # h0 == 0 -> recurrent term is exactly zero; W_hh never DMA'd.
    B, I = x.shape
    H = w_ih.shape[0]
    O = w_fc.shape[0]

    # One-time, call-constant weight prep (tiny): MXU-native layouts + row biases.
    w_ih_t = jnp.transpose(w_ih)              # (I, H)
    w_fc_t = jnp.transpose(w_fc)              # (H, O)
    b_rnn = (b_ih + b_hh).reshape(1, H)       # (1, H)
    b_out = b_fc.reshape(1, O)                # (1, O)

    bb = _pick_batch_tile(B, block_b)
    grid = (pl.cdiv(B, bb),)

    return pl.pallas_call(
        rnn_fc_kernel,
        out_shape=jax.ShapeDtypeStruct((B, O), x.dtype),
        grid=grid,
        in_specs=[
            pl.BlockSpec((bb, I), lambda i: (i, 0)),   # streamed batch tile of x
            pl.BlockSpec((I, H), lambda i: (0, 0)),    # resident weights
            pl.BlockSpec((1, H), lambda i: (0, 0)),
            pl.BlockSpec((H, O), lambda i: (0, 0)),
            pl.BlockSpec((1, O), lambda i: (0, 0)),
        ],
        out_specs=pl.BlockSpec((bb, O), lambda i: (i, 0)),
        compiler_params=pltpu.CompilerParams(
            dimension_semantics=("parallel",),         # shard batch tiles over TCs (v7x)
        ),
    )(x, w_ih_t, b_rnn, w_fc_t, b_out)


def init_params(key, input_size, hidden_size, output_size):
    # PyTorch nn.RNN / nn.Linear default init: U(-1/sqrt(fan), 1/sqrt(fan))
    ks = jax.random.split(key, 6)
    k_rnn = 1.0 / jnp.sqrt(hidden_size)
    k_fc = 1.0 / jnp.sqrt(hidden_size)
    w_ih = jax.random.uniform(ks[0], (hidden_size, input_size), jnp.float32, -k_rnn, k_rnn)
    w_hh = jax.random.uniform(ks[1], (hidden_size, hidden_size), jnp.float32, -k_rnn, k_rnn)
    b_ih = jax.random.uniform(ks[2], (hidden_size,), jnp.float32, -k_rnn, k_rnn)
    b_hh = jax.random.uniform(ks[3], (hidden_size,), jnp.float32, -k_rnn, k_rnn)
    w_fc = jax.random.uniform(ks[4], (output_size, hidden_size), jnp.float32, -k_fc, k_fc)
    b_fc = jax.random.uniform(ks[5], (output_size,), jnp.float32, -k_fc, k_fc)
    return (w_ih, w_hh, b_ih, b_hh, w_fc, b_fc)


def _reference(x, params):
    w_ih, w_hh, b_ih, b_hh, w_fc, b_fc = params
    h1 = jnp.tanh(x @ w_ih.T + b_ih + b_hh)   # h0 == 0
    return h1 @ w_fc.T + b_fc


if __name__ == "__main__":
    I, H, O = 16, 32, 8
    key = jax.random.PRNGKey(0)
    k_x, k_x2, k_p = jax.random.split(key, 3)
    params = init_params(k_p, I, H, O)

    fwd = jax.jit(rnn_forward)

    # Small shape (single tile).
    x = jax.random.normal(k_x, (8, I), jnp.float32)
    out = jax.block_until_ready(fwd(x, params))
    assert out.shape == (8, O)
    assert jnp.allclose(out, _reference(x, params), atol=1e-5, rtol=1e-5)

    # Larger ragged batch: exercises multi-step grid + edge masking + 2-TC split.
    x2 = jax.random.normal(k_x2, (200, I), jnp.float32)
    out2 = jax.block_until_ready(fwd(x2, params))
    assert out2.shape == (200, O)
    assert jnp.allclose(out2, _reference(x2, params), atol=1e-5, rtol=1e-5)

    print("KERNEL_OK")
</pallas_src>

<mosaic_0001>
module attributes {stable_mosaic.version = 11 : i64} {
  func.func @rnn_fc_kernel(%arg0: i32, %arg1: memref<8x16xf32, #tpu.memory_space<vmem>>, %arg2: memref<16x32xf32, #tpu.memory_space<vmem>>, %arg3: memref<1x32xf32, #tpu.memory_space<vmem>>, %arg4: memref<32x8xf32, #tpu.memory_space<vmem>>, %arg5: memref<1x8xf32, #tpu.memory_space<vmem>>, %arg6: memref<8x8xf32, #tpu.memory_space<vmem>>) attributes {dimension_semantics = [#tpu.dimension_semantics<parallel>], iteration_bounds = array<i64: 1>, scalar_prefetch = 0 : i64, scratch_operands = 0 : i64, tpu.core_type = #tpu.core_type<tc>, window_params = [{transform_indices = @transform_0, window_bounds = array<i64: 8, 16>}, {pipeline_mode = #tpu.pipeline_mode<synchronous>, transform_indices = @transform_1, window_bounds = array<i64: 16, 32>}, {pipeline_mode = #tpu.pipeline_mode<synchronous>, transform_indices = @transform_2, window_bounds = array<i64: 1, 32>}, {pipeline_mode = #tpu.pipeline_mode<synchronous>, transform_indices = @transform_3, window_bounds = array<i64: 32, 8>}, {pipeline_mode = #tpu.pipeline_mode<synchronous>, transform_indices = @transform_4, window_bounds = array<i64: 1, 8>}, {transform_indices = @transform_5, window_bounds = array<i64: 8, 8>}]} {
    %c0 = arith.constant 0 : index
    %c0_0 = arith.constant 0 : index
    %0 = vector.load %arg1[%c0, %c0_0] : memref<8x16xf32, #tpu.memory_space<vmem>>, vector<8x16xf32>
    %c0_1 = arith.constant 0 : index
    %c0_2 = arith.constant 0 : index
    %1 = vector.load %arg2[%c0_1, %c0_2] : memref<16x32xf32, #tpu.memory_space<vmem>>, vector<16x32xf32>
    %cst = arith.constant dense<0.000000e+00> : vector<8x32xf32>
    %2 = tpu.matmul %0, %1, %cst {dimension_numbers = #tpu.dot_dimension_numbers<[1], [0], [0], [1], [0, 0, 1, 1], [], []>} : vector<8x16xf32>, vector<16x32xf32>, vector<8x32xf32> -> vector<8x32xf32>
    %c0_3 = arith.constant 0 : index
    %c0_4 = arith.constant 0 : index
    %3 = vector.load %arg3[%c0_3, %c0_4] : memref<1x32xf32, #tpu.memory_space<vmem>>, vector<1x32xf32>
    %4 = vector.broadcast %3 : vector<1x32xf32> to vector<8x32xf32>
    %5 = arith.addf %2, %4 : vector<8x32xf32>
    %6 = math.tanh %5 : vector<8x32xf32>
    %c0_5 = arith.constant 0 : index
    %c0_6 = arith.constant 0 : index
    %7 = vector.load %arg4[%c0_5, %c0_6] : memref<32x8xf32, #tpu.memory_space<vmem>>, vector<32x8xf32>
    %cst_7 = arith.constant dense<0.000000e+00> : vector<8x8xf32>
    %8 = tpu.matmul %6, %7, %cst_7 {dimension_numbers = #tpu.dot_dimension_numbers<[1], [0], [0], [1], [0, 0, 1, 1], [], []>} : vector<8x32xf32>, vector<32x8xf32>, vector<8x8xf32> -> vector<8x8xf32>
    %c0_8 = arith.constant 0 : index
    %c0_9 = arith.constant 0 : index
    %9 = vector.load %arg5[%c0_8, %c0_9] : memref<1x8xf32, #tpu.memory_space<vmem>>, vector<1x8xf32>
    %10 = vector.broadcast %9 : vector<1x8xf32> to vector<8x8xf32>
    %11 = arith.addf %8, %10 : vector<8x8xf32>
    %c0_10 = arith.constant 0 : index
    %c0_11 = arith.constant 0 : index
    %12 = vector.load %arg6[%c0_10, %c0_11] : memref<8x8xf32, #tpu.memory_space<vmem>>, vector<8x8xf32>
    tpu.vector_store %arg6[%c0_10, %c0_11], %11 {strides = array<i32>} : memref<8x8xf32, #tpu.memory_space<vmem>>, vector<8x8xf32>,
    return
  }
  func.func @transform_0(%arg0: i32) -> (i32, i32) {
    %c0_i32 = arith.constant 0 : i32
    %c0_i32_0 = arith.constant 0 : i32
    return %arg0, %c0_i32 : i32, i32
  }
  func.func @transform_1(%arg0: i32) -> (i32, i32) {
    %c0_i32 = arith.constant 0 : i32
    %c0_i32_0 = arith.constant 0 : i32
    %c0_i32_1 = arith.constant 0 : i32
    return %c0_i32, %c0_i32_0 : i32, i32
  }
  func.func @transform_2(%arg0: i32) -> (i32, i32) {
    %c0_i32 = arith.constant 0 : i32
    %c0_i32_0 = arith.constant 0 : i32
    %c0_i32_1 = arith.constant 0 : i32
    return %c0_i32, %c0_i32_0 : i32, i32
  }
  func.func @transform_3(%arg0: i32) -> (i32, i32) {
    %c0_i32 = arith.constant 0 : i32
    %c0_i32_0 = arith.constant 0 : i32
    %c0_i32_1 = arith.constant 0 : i32
    return %c0_i32, %c0_i32_0 : i32, i32
  }
  func.func @transform_4(%arg0: i32) -> (i32, i32) {
    %c0_i32 = arith.constant 0 : i32
    %c0_i32_0 = arith.constant 0 : i32
    %c0_i32_1 = arith.constant 0 : i32
    return %c0_i32, %c0_i32_0 : i32, i32
  }
  func.func @transform_5(%arg0: i32) -> (i32, i32) {
    %c0_i32 = arith.constant 0 : i32
    %c0_i32_0 = arith.constant 0 : i32
    return %arg0, %c0_i32 : i32, i32
  }
}

</mosaic_0001>

<bundles_post_ra>
// kernel: rnn_forward.1
= control target key start
LH: loop header
LB: loop body
LE: loop exit
PB: predicated region body
PF: predicated region fallthrough
CT: control target
= control target key end

     0   :  { %v276_v2 = vmov 0.0|0.0   ;;  %vm277_vm0 = vmmov 0   ;;  %v278_v4 = vmov 0.0   ;;  %s349_s0 = inlined_call_operand.vmem [shape: f32[8,16], index: 0, kind: input, shape index: {}]   ;;  %s350_s1 = inlined_call_operand.vmem [shape: f32[16,32], index: 1, kind: input, shape index: {}]   ;;  %s351_s2 = inlined_call_operand.vmem [shape: f32[1,32], index: 2, kind: input, shape index: {}]   ;;  %s352_s3 = inlined_call_operand.vmem [shape: f32[32,8], index: 3, kind: input, shape index: {}]   ;;  %s353_s4 = inlined_call_operand.vmem [shape: f32[1,8], index: 4, kind: input, shape index: {}]   ;;  %s354_s5 = inlined_call_operand.hbm [shape: f32[8,8], index: 5, kind: output, shape index: {}]  }
   0x1   :  { %v22_v0 = vld [vmem:[%s350_s1] sm:$0xff]  ;;  %v23_v1 = vld [vmem:[%s350_s1 + $0x8] sm:$0xff]  ;;  %237 = vmatprep.subr.bf16.mxu0 %v276_v2  ;;  %223 = vmatprep.mubr.msk.f32.mxu0 %vm277_vm0, %v278_v4 }
   0x2   :  { %v238_v3 = vpack.c.bf16 %v23_v1, %v22_v0 }
   0x3   :  { %10 = vsyncpa [#allocation3], 0  ;;  %240 = vmatprep.subr.bf16.mxu1 %v276_v2  ;;  %234 = vmatprep.mubr.msk.f32.mxu1 %vm277_vm0, %v278_v4  ;;  %v21_v5 = vld [vmem:[%s349_s0] sm:$0xff]  ;;  %vm31_vm1 = vcmask 130048   ;;  %v107_v7 = vld [vmem:[%s352_s3 + $0x8] sm:$0xff]  ;;  %vm117_vm2 = vcmask 261120  }
   0x4   :  { %239 = vmatpush3.bf16.msra.mxu0 %v238_v3  ;;  %v106_v6 = vld [vmem:[%s352_s3] sm:$0xff]  ;;  %v108_v8 = vld [vmem:[%s352_s3 + $0x10] sm:$0xff]  ;;  %v109_v10 = vld [vmem:[%s352_s3 + $0x18] sm:$0xff]  ;;  %s279_s3 = smov [#allocation2]   ;;  %vm191_vm3 = vcmask 64512  }
   0x5   :  { %v241_v9 = vpack.c.bf16 %v107_v7, %v106_v6  ;;  %v244_v11 = vpack.c.bf16 %v109_v10, %v108_v8  ;;  %v207_v12 = vld [vmem:[%s351_s2] ss:$0 sm:$0xff]  ;;  %s199_s9 = sshll.u32 %s279_s3, 4  ;;  %s200_s9 = int_to_ptr.vmem [resolvable:$true] %s199_s9 }
   0x6   :  { %v209_v17 = vld [vmem:[%s353_s4] ss:$0 sm:$0xff]  ;;  %s252_s2 = scalar_lea.vmem %s200_s9, 128  ;;  %p257_p1 = scmp.lt.s32.totalorder %s200_s9, %s200_s9 }
   0x7   :  { %224 = vmatmul.mubr.msk.f32.vlgmr.msra.gmra.mrb[0].mxu0 %vm31_vm1, %v21_v5  ;;  %242 = vmatpush3.bf16.msra.mxu1 %v241_v9  ;;  %p253_p0 = scmp.ne.s32.totalorder %s200_s9, %s252_s2  ;;  %p258_p2 = scmp.lt.s32.totalorder %s252_s2, %s252_s2 }
   0x8   :  { %243 = vmatprep.subr.bf16.mxu1 %v276_v2 }
   0x9   :  { %p259_p3 = por %p258_p2, %p257_p1 }
   0xb   :  { %245 = vmatpush3.bf16.msra.mxu1 %v244_v11  ;;  %p260_p4 = pnand %p259_p3, %p253_p0 }
  0xda   :  { %v101_v13 = vpop.f32.mrb[0].mxu0 }
  0xdb   :  { %v102_v14 = vadd.f32 %v207_v12, %v101_v13  ;;  %v225_v15 = vpop.f32.mrb[1].mxu0 }
  0xdd   :  { %250 = vtanh.f32 %v102_v14 }
  0xe7   :  { %v251_v16 = vpop.eup %250 }
  0xe8   :  { %235 = vmatmul.mubr.msk.f32.vlgmr.msra.gmra.mrb[0].mxu1 %vm117_vm2, %v251_v16 }
 0x1bb   :  { %v187_v18 = vpop.f32.mrb[0].mxu1 }
 0x1bc   :  { %v188_v19 = vadd.f32 %v209_v17, %v187_v18  ;;  %v236_v20 = vpop.f32.mrb[1].mxu1 }
 0x1be   :  { %192 = vst.msk [vmem:[#allocation2] sm:$0xff] %vm191_vm3, %v188_v19 }
 0x1bf   :  { %263 = shalt.err (!%p260_p4)
}
 0x1c0   :  { %s264_s12 = scalar_lea.hbm %s354_s5, 128 }
 0x1c1   :  { %p265_p5 = scmp.ne.s32.totalorder %s354_s5, %s264_s12  ;;  %p268_p6 = scmp.lt.u32.totalorder %s264_s12, %s354_s5 }
 0x1c3   :  { %p270_p7 = pnand %p268_p6, %p265_p5 }
 0x1c5   :  { %273 = shalt.err (!%p270_p7)
}
 0x1c6   :  { %202 = dma.vmem_to_hbm [thread:$0]  %s200_s9, 128, %s354_s5, [#allocation3]  }
 0x1c7   :  { %274 = dma.done.wait [#allocation3], 128  }
 0x1c8   :  { %275 = vsyncadd [#allocation3], 4294967168 }
 0x1c9   :  { %206 = vsyncpa [#allocation3], 1 }

</bundles_post_ra>
